<compile_context>
chip_gen: v7x
topology: tpu7x:2x2x1
jax: 0.10.0
libtpu: 0.0.40
codegen_flags: <defaults>
</compile_context>

<pallas_src>
import functools

import jax
import jax.numpy as jnp
import numpy as np
from jax.experimental import pallas as pl
from jax.experimental.pallas import tpu as pltpu


def _mha_kernel(q_ref, k_ref, v_ref,
                wq_ref, wk_ref, wv_ref,
                bq_ref, bk_ref, bv_ref,
                out_ref, *, n_heads, d_k, d_v):
    # One batch element per grid step, full sequence in the block.
    x_q = q_ref[0].astype(jnp.float32)          # (S, d_model)
    x_k = k_ref[0].astype(jnp.float32)
    x_v = v_ref[0].astype(jnp.float32)

    inv_scale = jnp.float32(1.0 / np.sqrt(d_k))

    # Fused QKV projections (nn.Linear: x @ W^T + b; weights passed pre-transposed).
    # 1/sqrt(d_k) folded into Q once, instead of scaling each (S,S) score tile.
    q = (jnp.dot(x_q, wq_ref[...].astype(jnp.float32),
                 preferred_element_type=jnp.float32)
         + bq_ref[...].astype(jnp.float32)) * inv_scale
    k = (jnp.dot(x_k, wk_ref[...].astype(jnp.float32),
                 preferred_element_type=jnp.float32)
         + bk_ref[...].astype(jnp.float32))
    v = (jnp.dot(x_v, wv_ref[...].astype(jnp.float32),
                 preferred_element_type=jnp.float32)
         + bv_ref[...].astype(jnp.float32))

    ctx_heads = []
    # n_heads is small and static: unrolled per-head attention on 2-D tiles.
    for h in range(n_heads):
        qh = q[:, h * d_k:(h + 1) * d_k]        # (S, d_k), already scaled
        kh = k[:, h * d_k:(h + 1) * d_k]        # (S, d_k)
        vh = v[:, h * d_v:(h + 1) * d_v]        # (S, d_v)
        # scores = qh @ kh^T  -- contraction on last dims, no materialized
        # transpose of K.
        scores = jax.lax.dot_general(
            qh, kh, (((1,), (1,)), ((), ())),
            preferred_element_type=jnp.float32)                   # (S, S)
        e = jnp.exp(scores)                     # spec uses raw exp (no max-subtraction)
        inv_den = 1.0 / (jnp.sum(e, axis=-1, keepdims=True) + 1e-8)   # (S, 1)
        attn = e * inv_den
        ctx_heads.append(
            jnp.dot(attn, vh, preferred_element_type=jnp.float32))   # (S, d_v)

    # Single lane-dense store of the concatenated heads: (S, n_heads*d_v).
    out_ref[0] = jnp.concatenate(ctx_heads, axis=-1).astype(out_ref.dtype)
    # TODO(synk): optional attn_mask path (scores * mask) not implemented;
    # this forward corresponds to attn_mask=None.


def multi_head_attention(Q, K, V, Wq, Wk, Wv, bq, bk, bv, *, n_heads, d_k, d_v):
    """Q, K, V: (B, S, d_model); weights pre-transposed to (d_model, n_heads*d_{k,v});
    biases (1, n_heads*d_{k,v}).  Returns (B, S, n_heads*d_v)."""
    B, S, d_model = Q.shape
    qk_dim = n_heads * d_k
    v_dim = n_heads * d_v
    kernel = functools.partial(_mha_kernel, n_heads=n_heads, d_k=d_k, d_v=d_v)

    return pl.pallas_call(
        kernel,
        out_shape=jax.ShapeDtypeStruct((B, S, v_dim), Q.dtype),
        grid_spec=pltpu.PrefetchScalarGridSpec(
            num_scalar_prefetch=0,
            grid=(B,),
            in_specs=[
                pl.BlockSpec((1, S, d_model), lambda b: (b, 0, 0)),   # Q
                pl.BlockSpec((1, S, d_model), lambda b: (b, 0, 0)),   # K
                pl.BlockSpec((1, S, d_model), lambda b: (b, 0, 0)),   # V
                pl.BlockSpec((d_model, qk_dim), lambda b: (0, 0)),    # Wq (resident)
                pl.BlockSpec((d_model, qk_dim), lambda b: (0, 0)),    # Wk (resident)
                pl.BlockSpec((d_model, v_dim), lambda b: (0, 0)),     # Wv (resident)
                pl.BlockSpec((1, qk_dim), lambda b: (0, 0)),          # bq
                pl.BlockSpec((1, qk_dim), lambda b: (0, 0)),          # bk
                pl.BlockSpec((1, v_dim), lambda b: (0, 0)),           # bv
            ],
            out_specs=pl.BlockSpec((1, S, v_dim), lambda b: (b, 0, 0)),
        ),
        compiler_params=pltpu.CompilerParams(
            dimension_semantics=("parallel",)),
    )(Q, K, V, Wq, Wk, Wv, bq, bk, bv)


def mha_ref(Q, K, V, Wq, Wk, Wv, bq, bk, bv, *, n_heads, d_k, d_v):
    """Pure-JAX reference mirroring the PyTorch forward (attn_mask=None)."""
    hp = jax.lax.Precision.HIGHEST
    B, S, _ = Q.shape
    q = jnp.matmul(Q, Wq, precision=hp) + bq
    k = jnp.matmul(K, Wk, precision=hp) + bk
    v = jnp.matmul(V, Wv, precision=hp) + bv
    q = q.reshape(B, S, n_heads, d_k).transpose(0, 2, 1, 3)
    k = k.reshape(B, S, n_heads, d_k).transpose(0, 2, 1, 3)
    v = v.reshape(B, S, n_heads, d_v).transpose(0, 2, 1, 3)
    scores = jnp.einsum('bhqd,bhkd->bhqk', q, k, precision=hp) / np.sqrt(d_k)
    scores = jnp.exp(scores)
    attn = scores / (jnp.sum(scores, axis=-1, keepdims=True) + 1e-8)
    ctx = jnp.einsum('bhqk,bhkd->bhqd', attn, v, precision=hp)
    return ctx.transpose(0, 2, 1, 3).reshape(B, S, n_heads * d_v)


if __name__ == "__main__":
    key = jax.random.PRNGKey(0)
    B, S, d_model = 2, 8, 32
    n_heads, d_k, d_v = 4, 8, 8

    ks = jax.random.split(key, 9)

    def xavier_uniform(k, fan_in, fan_out):
        limit = float(np.sqrt(6.0 / (fan_in + fan_out)))
        return jax.random.uniform(k, (fan_in, fan_out), jnp.float32, -limit, limit)

    Q = jax.random.normal(ks[0], (B, S, d_model), jnp.float32)
    K = jax.random.normal(ks[1], (B, S, d_model), jnp.float32)
    V = jax.random.normal(ks[2], (B, S, d_model), jnp.float32)

    Wq = xavier_uniform(ks[3], d_model, n_heads * d_k)
    Wk = xavier_uniform(ks[4], d_model, n_heads * d_k)
    Wv = xavier_uniform(ks[5], d_model, n_heads * d_v)
    blim = 1.0 / float(np.sqrt(d_model))   # nn.Linear default bias init range
    bq = jax.random.uniform(ks[6], (1, n_heads * d_k), jnp.float32, -blim, blim)
    bk = jax.random.uniform(ks[7], (1, n_heads * d_k), jnp.float32, -blim, blim)
    bv = jax.random.uniform(ks[8], (1, n_heads * d_v), jnp.float32, -blim, blim)

    out = multi_head_attention(Q, K, V, Wq, Wk, Wv, bq, bk, bv,
                               n_heads=n_heads, d_k=d_k, d_v=d_v)
    jax.block_until_ready(out)

    ref = mha_ref(Q, K, V, Wq, Wk, Wv, bq, bk, bv,
                  n_heads=n_heads, d_k=d_k, d_v=d_v)
    assert out.shape == (B, S, n_heads * d_v), out.shape
    max_err = float(jnp.max(jnp.abs(out - ref)))
    assert jnp.allclose(out, ref, rtol=2e-4, atol=2e-4), max_err
    print("KERNEL_OK")
</pallas_src>

<mosaic_0001>
module attributes {stable_mosaic.version = 11 : i64} {
  func.func @_mha_kernel(%arg0: i32, %arg1: memref<1x8x32xf32, #tpu.memory_space<vmem>>, %arg2: memref<1x8x32xf32, #tpu.memory_space<vmem>>, %arg3: memref<1x8x32xf32, #tpu.memory_space<vmem>>, %arg4: memref<32x32xf32, #tpu.memory_space<vmem>>, %arg5: memref<32x32xf32, #tpu.memory_space<vmem>>, %arg6: memref<32x32xf32, #tpu.memory_space<vmem>>, %arg7: memref<1x32xf32, #tpu.memory_space<vmem>>, %arg8: memref<1x32xf32, #tpu.memory_space<vmem>>, %arg9: memref<1x32xf32, #tpu.memory_space<vmem>>, %arg10: memref<1x8x32xf32, #tpu.memory_space<vmem>>) attributes {dimension_semantics = [#tpu.dimension_semantics<parallel>], iteration_bounds = array<i64: 2>, scalar_prefetch = 0 : i64, scratch_operands = 0 : i64, tpu.core_type = #tpu.core_type<tc>, window_params = [{transform_indices = @transform_0, window_bounds = array<i64: 1, 8, 32>}, {transform_indices = @transform_1, window_bounds = array<i64: 1, 8, 32>}, {transform_indices = @transform_2, window_bounds = array<i64: 1, 8, 32>}, {pipeline_mode = #tpu.pipeline_mode<synchronous>, transform_indices = @transform_3, window_bounds = array<i64: 32, 32>}, {pipeline_mode = #tpu.pipeline_mode<synchronous>, transform_indices = @transform_4, window_bounds = array<i64: 32, 32>}, {pipeline_mode = #tpu.pipeline_mode<synchronous>, transform_indices = @transform_5, window_bounds = array<i64: 32, 32>}, {pipeline_mode = #tpu.pipeline_mode<synchronous>, transform_indices = @transform_6, window_bounds = array<i64: 1, 32>}, {pipeline_mode = #tpu.pipeline_mode<synchronous>, transform_indices = @transform_7, window_bounds = array<i64: 1, 32>}, {pipeline_mode = #tpu.pipeline_mode<synchronous>, transform_indices = @transform_8, window_bounds = array<i64: 1, 32>}, {transform_indices = @transform_9, window_bounds = array<i64: 1, 8, 32>}]} {
    %c0 = arith.constant 0 : index
    %c0_0 = arith.constant 0 : index
    %c0_1 = arith.constant 0 : index
    %0 = vector.load %arg1[%c0, %c0_0, %c0_1] : memref<1x8x32xf32, #tpu.memory_space<vmem>>, vector<1x8x32xf32>
    %1 = vector.shape_cast %0 : vector<1x8x32xf32> to vector<8x32xf32>
    %c0_2 = arith.constant 0 : index
    %c0_3 = arith.constant 0 : index
    %c0_4 = arith.constant 0 : index
    %2 = vector.load %arg2[%c0_2, %c0_3, %c0_4] : memref<1x8x32xf32, #tpu.memory_space<vmem>>, vector<1x8x32xf32>
    %3 = vector.shape_cast %2 : vector<1x8x32xf32> to vector<8x32xf32>
    %c0_5 = arith.constant 0 : index
    %c0_6 = arith.constant 0 : index
    %c0_7 = arith.constant 0 : index
    %4 = vector.load %arg3[%c0_5, %c0_6, %c0_7] : memref<1x8x32xf32, #tpu.memory_space<vmem>>, vector<1x8x32xf32>
    %5 = vector.shape_cast %4 : vector<1x8x32xf32> to vector<8x32xf32>
    %c0_8 = arith.constant 0 : index
    %c0_9 = arith.constant 0 : index
    %6 = vector.load %arg4[%c0_8, %c0_9] : memref<32x32xf32, #tpu.memory_space<vmem>>, vector<32x32xf32>
    %cst = arith.constant dense<0.000000e+00> : vector<8x32xf32>
    %7 = tpu.matmul %1, %6, %cst {dimension_numbers = #tpu.dot_dimension_numbers<[1], [0], [0], [1], [0, 0, 1, 1], [], []>} : vector<8x32xf32>, vector<32x32xf32>, vector<8x32xf32> -> vector<8x32xf32>
    %c0_10 = arith.constant 0 : index
    %c0_11 = arith.constant 0 : index
    %8 = vector.load %arg7[%c0_10, %c0_11] : memref<1x32xf32, #tpu.memory_space<vmem>>, vector<1x32xf32>
    %9 = vector.broadcast %8 : vector<1x32xf32> to vector<8x32xf32>
    %10 = arith.addf %7, %9 : vector<8x32xf32>
    %cst_12 = arith.constant 0.353553385 : f32
    %11 = vector.broadcast %cst_12 : f32 to vector<8x32xf32>
    %12 = arith.mulf %10, %11 : vector<8x32xf32>
    %c0_13 = arith.constant 0 : index
    %c0_14 = arith.constant 0 : index
    %13 = vector.load %arg5[%c0_13, %c0_14] : memref<32x32xf32, #tpu.memory_space<vmem>>, vector<32x32xf32>
    %cst_15 = arith.constant dense<0.000000e+00> : vector<8x32xf32>
    %14 = tpu.matmul %3, %13, %cst_15 {dimension_numbers = #tpu.dot_dimension_numbers<[1], [0], [0], [1], [0, 0, 1, 1], [], []>} : vector<8x32xf32>, vector<32x32xf32>, vector<8x32xf32> -> vector<8x32xf32>
    %c0_16 = arith.constant 0 : index
    %c0_17 = arith.constant 0 : index
    %15 = vector.load %arg8[%c0_16, %c0_17] : memref<1x32xf32, #tpu.memory_space<vmem>>, vector<1x32xf32>
    %16 = vector.broadcast %15 : vector<1x32xf32> to vector<8x32xf32>
    %17 = arith.addf %14, %16 : vector<8x32xf32>
    %c0_18 = arith.constant 0 : index
    %c0_19 = arith.constant 0 : index
    %18 = vector.load %arg6[%c0_18, %c0_19] : memref<32x32xf32, #tpu.memory_space<vmem>>, vector<32x32xf32>
    %cst_20 = arith.constant dense<0.000000e+00> : vector<8x32xf32>
    %19 = tpu.matmul %5, %18, %cst_20 {dimension_numbers = #tpu.dot_dimension_numbers<[1], [0], [0], [1], [0, 0, 1, 1], [], []>} : vector<8x32xf32>, vector<32x32xf32>, vector<8x32xf32> -> vector<8x32xf32>
    %c0_21 = arith.constant 0 : index
    %c0_22 = arith.constant 0 : index
    %20 = vector.load %arg9[%c0_21, %c0_22] : memref<1x32xf32, #tpu.memory_space<vmem>>, vector<1x32xf32>
    %21 = vector.broadcast %20 : vector<1x32xf32> to vector<8x32xf32>
    %22 = arith.addf %19, %21 : vector<8x32xf32>
    %23 = vector.extract_strided_slice %12 {offsets = [0, 0], sizes = [8, 8], strides = [1, 1]} : vector<8x32xf32> to vector<8x8xf32>
    %24 = vector.extract_strided_slice %17 {offsets = [0, 0], sizes = [8, 8], strides = [1, 1]} : vector<8x32xf32> to vector<8x8xf32>
    %25 = vector.extract_strided_slice %22 {offsets = [0, 0], sizes = [8, 8], strides = [1, 1]} : vector<8x32xf32> to vector<8x8xf32>
    %cst_23 = arith.constant dense<0.000000e+00> : vector<8x8xf32>
    %26 = tpu.matmul %23, %24, %cst_23 {dimension_numbers = #tpu.dot_dimension_numbers<[1], [1], [0], [0], [0, 0, 1, 0], [], []>} : vector<8x8xf32>, vector<8x8xf32>, vector<8x8xf32> -> vector<8x8xf32>
    %27 = math.exp %26 : vector<8x8xf32>
    %cst_24 = arith.constant dense<0.000000e+00> : vector<8xf32>
    %28 = vector.multi_reduction <add>, %27, %cst_24 [1] : vector<8x8xf32> to vector<8xf32>
    %29 = vector.shape_cast %28 : vector<8xf32> to vector<8x1xf32>
    %cst_25 = arith.constant 9.99999993E-9 : f32
    %30 = vector.broadcast %cst_25 : f32 to vector<8x1xf32>
    %31 = arith.addf %29, %30 : vector<8x1xf32>
    %cst_26 = arith.constant 1.000000e+00 : f32
    %32 = vector.broadcast %cst_26 : f32 to vector<8x1xf32>
    %33 = arith.divf %32, %31 : vector<8x1xf32>
    %34 = vector.broadcast %33 : vector<8x1xf32> to vector<8x8xf32>
    %35 = arith.mulf %27, %34 : vector<8x8xf32>
    %cst_27 = arith.constant dense<0.000000e+00> : vector<8x8xf32>
    %36 = tpu.matmul %35, %25, %cst_27 {dimension_numbers = #tpu.dot_dimension_numbers<[1], [0], [0], [1], [0, 0, 1, 1], [], []>} : vector<8x8xf32>, vector<8x8xf32>, vector<8x8xf32> -> vector<8x8xf32>
    %37 = vector.extract_strided_slice %12 {offsets = [0, 8], sizes = [8, 8], strides = [1, 1]} : vector<8x32xf32> to vector<8x8xf32>
    %38 = vector.extract_strided_slice %17 {offsets = [0, 8], sizes = [8, 8], strides = [1, 1]} : vector<8x32xf32> to vector<8x8xf32>
    %39 = vector.extract_strided_slice %22 {offsets = [0, 8], sizes = [8, 8], strides = [1, 1]} : vector<8x32xf32> to vector<8x8xf32>
    %cst_28 = arith.constant dense<0.000000e+00> : vector<8x8xf32>
    %40 = tpu.matmul %37, %38, %cst_28 {dimension_numbers = #tpu.dot_dimension_numbers<[1], [1], [0], [0], [0, 0, 1, 0], [], []>} : vector<8x8xf32>, vector<8x8xf32>, vector<8x8xf32> -> vector<8x8xf32>
    %41 = math.exp %40 : vector<8x8xf32>
    %cst_29 = arith.constant dense<0.000000e+00> : vector<8xf32>
    %42 = vector.multi_reduction <add>, %41, %cst_29 [1] : vector<8x8xf32> to vector<8xf32>
    %43 = vector.shape_cast %42 : vector<8xf32> to vector<8x1xf32>
    %cst_30 = arith.constant 9.99999993E-9 : f32
    %44 = vector.broadcast %cst_30 : f32 to vector<8x1xf32>
    %45 = arith.addf %43, %44 : vector<8x1xf32>
    %cst_31 = arith.constant 1.000000e+00 : f32
    %46 = vector.broadcast %cst_31 : f32 to vector<8x1xf32>
    %47 = arith.divf %46, %45 : vector<8x1xf32>
    %48 = vector.broadcast %47 : vector<8x1xf32> to vector<8x8xf32>
    %49 = arith.mulf %41, %48 : vector<8x8xf32>
    %cst_32 = arith.constant dense<0.000000e+00> : vector<8x8xf32>
    %50 = tpu.matmul %49, %39, %cst_32 {dimension_numbers = #tpu.dot_dimension_numbers<[1], [0], [0], [1], [0, 0, 1, 1], [], []>} : vector<8x8xf32>, vector<8x8xf32>, vector<8x8xf32> -> vector<8x8xf32>
    %51 = vector.extract_strided_slice %12 {offsets = [0, 16], sizes = [8, 8], strides = [1, 1]} : vector<8x32xf32> to vector<8x8xf32>
    %52 = vector.extract_strided_slice %17 {offsets = [0, 16], sizes = [8, 8], strides = [1, 1]} : vector<8x32xf32> to vector<8x8xf32>
    %53 = vector.extract_strided_slice %22 {offsets = [0, 16], sizes = [8, 8], strides = [1, 1]} : vector<8x32xf32> to vector<8x8xf32>
    %cst_33 = arith.constant dense<0.000000e+00> : vector<8x8xf32>
    %54 = tpu.matmul %51, %52, %cst_33 {dimension_numbers = #tpu.dot_dimension_numbers<[1], [1], [0], [0], [0, 0, 1, 0], [], []>} : vector<8x8xf32>, vector<8x8xf32>, vector<8x8xf32> -> vector<8x8xf32>
    %55 = math.exp %54 : vector<8x8xf32>
    %cst_34 = arith.constant dense<0.000000e+00> : vector<8xf32>
    %56 = vector.multi_reduction <add>, %55, %cst_34 [1] : vector<8x8xf32> to vector<8xf32>
    %57 = vector.shape_cast %56 : vector<8xf32> to vector<8x1xf32>
    %cst_35 = arith.constant 9.99999993E-9 : f32
    %58 = vector.broadcast %cst_35 : f32 to vector<8x1xf32>
    %59 = arith.addf %57, %58 : vector<8x1xf32>
    %cst_36 = arith.constant 1.000000e+00 : f32
    %60 = vector.broadcast %cst_36 : f32 to vector<8x1xf32>
    %61 = arith.divf %60, %59 : vector<8x1xf32>
    %62 = vector.broadcast %61 : vector<8x1xf32> to vector<8x8xf32>
    %63 = arith.mulf %55, %62 : vector<8x8xf32>
    %cst_37 = arith.constant dense<0.000000e+00> : vector<8x8xf32>
    %64 = tpu.matmul %63, %53, %cst_37 {dimension_numbers = #tpu.dot_dimension_numbers<[1], [0], [0], [1], [0, 0, 1, 1], [], []>} : vector<8x8xf32>, vector<8x8xf32>, vector<8x8xf32> -> vector<8x8xf32>
    %65 = vector.extract_strided_slice %12 {offsets = [0, 24], sizes = [8, 8], strides = [1, 1]} : vector<8x32xf32> to vector<8x8xf32>
    %66 = vector.extract_strided_slice %17 {offsets = [0, 24], sizes = [8, 8], strides = [1, 1]} : vector<8x32xf32> to vector<8x8xf32>
    %67 = vector.extract_strided_slice %22 {offsets = [0, 24], sizes = [8, 8], strides = [1, 1]} : vector<8x32xf32> to vector<8x8xf32>
    %cst_38 = arith.constant dense<0.000000e+00> : vector<8x8xf32>
    %68 = tpu.matmul %65, %66, %cst_38 {dimension_numbers = #tpu.dot_dimension_numbers<[1], [1], [0], [0], [0, 0, 1, 0], [], []>} : vector<8x8xf32>, vector<8x8xf32>, vector<8x8xf32> -> vector<8x8xf32>
    %69 = math.exp %68 : vector<8x8xf32>
    %cst_39 = arith.constant dense<0.000000e+00> : vector<8xf32>
    %70 = vector.multi_reduction <add>, %69, %cst_39 [1] : vector<8x8xf32> to vector<8xf32>
    %71 = vector.shape_cast %70 : vector<8xf32> to vector<8x1xf32>
    %cst_40 = arith.constant 9.99999993E-9 : f32
    %72 = vector.broadcast %cst_40 : f32 to vector<8x1xf32>
    %73 = arith.addf %71, %72 : vector<8x1xf32>
    %cst_41 = arith.constant 1.000000e+00 : f32
    %74 = vector.broadcast %cst_41 : f32 to vector<8x1xf32>
    %75 = arith.divf %74, %73 : vector<8x1xf32>
    %76 = vector.broadcast %75 : vector<8x1xf32> to vector<8x8xf32>
    %77 = arith.mulf %69, %76 : vector<8x8xf32>
    %cst_42 = arith.constant dense<0.000000e+00> : vector<8x8xf32>
    %78 = tpu.matmul %77, %67, %cst_42 {dimension_numbers = #tpu.dot_dimension_numbers<[1], [0], [0], [1], [0, 0, 1, 1], [], []>} : vector<8x8xf32>, vector<8x8xf32>, vector<8x8xf32> -> vector<8x8xf32>
    %79 = tpu.concatenate %36, %50, %64, %78 in 1 : vector<8x8xf32>, vector<8x8xf32>, vector<8x8xf32>, vector<8x8xf32> -> vector<8x32xf32>
    %c0_43 = arith.constant 0 : index
    %c0_44 = arith.constant 0 : index
    %c0_45 = arith.constant 0 : index
    %80 = vector.load %arg10[%c0_43, %c0_44, %c0_45] : memref<1x8x32xf32, #tpu.memory_space<vmem>>, vector<1x8x32xf32>
    %81 = vector.shape_cast %80 : vector<1x8x32xf32> to vector<8x32xf32>
    %82 = vector.shape_cast %79 : vector<8x32xf32> to vector<1x8x32xf32>
    tpu.vector_store %arg10[%c0_43, %c0_44, %c0_45], %82 {strides = array<i32>} : memref<1x8x32xf32, #tpu.memory_space<vmem>>, vector<1x8x32xf32>,
    return
  }
  func.func @transform_0(%arg0: i32) -> (i32, i32, i32) {
    %c0_i32 = arith.constant 0 : i32
    %c0_i32_0 = arith.constant 0 : i32
    %c0_i32_1 = arith.constant 0 : i32
    return %arg0, %c0_i32, %c0_i32_0 : i32, i32, i32
  }
  func.func @transform_1(%arg0: i32) -> (i32, i32, i32) {
    %c0_i32 = arith.constant 0 : i32
    %c0_i32_0 = arith.constant 0 : i32
    %c0_i32_1 = arith.constant 0 : i32
    return %arg0, %c0_i32, %c0_i32_0 : i32, i32, i32
  }
  func.func @transform_2(%arg0: i32) -> (i32, i32, i32) {
    %c0_i32 = arith.constant 0 : i32
    %c0_i32_0 = arith.constant 0 : i32
    %c0_i32_1 = arith.constant 0 : i32
    return %arg0, %c0_i32, %c0_i32_0 : i32, i32, i32
  }
  func.func @transform_3(%arg0: i32) -> (i32, i32) {
    %c0_i32 = arith.constant 0 : i32
    %c0_i32_0 = arith.constant 0 : i32
    %c0_i32_1 = arith.constant 0 : i32
    return %c0_i32, %c0_i32_0 : i32, i32
  }
  func.func @transform_4(%arg0: i32) -> (i32, i32) {
    %c0_i32 = arith.constant 0 : i32
    %c0_i32_0 = arith.constant 0 : i32
    %c0_i32_1 = arith.constant 0 : i32
    return %c0_i32, %c0_i32_0 : i32, i32
  }
  func.func @transform_5(%arg0: i32) -> (i32, i32) {
    %c0_i32 = arith.constant 0 : i32
    %c0_i32_0 = arith.constant 0 : i32
    %c0_i32_1 = arith.constant 0 : i32
    return %c0_i32, %c0_i32_0 : i32, i32
  }
  func.func @transform_6(%arg0: i32) -> (i32, i32) {
    %c0_i32 = arith.constant 0 : i32
    %c0_i32_0 = arith.constant 0 : i32
    %c0_i32_1 = arith.constant 0 : i32
    return %c0_i32, %c0_i32_0 : i32, i32
  }
  func.func @transform_7(%arg0: i32) -> (i32, i32) {
    %c0_i32 = arith.constant 0 : i32
    %c0_i32_0 = arith.constant 0 : i32
    %c0_i32_1 = arith.constant 0 : i32
    return %c0_i32, %c0_i32_0 : i32, i32
  }
  func.func @transform_8(%arg0: i32) -> (i32, i32) {
    %c0_i32 = arith.constant 0 : i32
    %c0_i32_0 = arith.constant 0 : i32
    %c0_i32_1 = arith.constant 0 : i32
    return %c0_i32, %c0_i32_0 : i32, i32
  }
  func.func @transform_9(%arg0: i32) -> (i32, i32, i32) {
    %c0_i32 = arith.constant 0 : i32
    %c0_i32_0 = arith.constant 0 : i32
    %c0_i32_1 = arith.constant 0 : i32
    return %arg0, %c0_i32, %c0_i32_0 : i32, i32, i32
  }
}

</mosaic_0001>

<bundles_post_ra>
// kernel: tpu_custom_call.1
= control target key start
LH: loop header
LB: loop body
LE: loop exit
PB: predicated region body
PF: predicated region fallthrough
CT: control target
= control target key end

     0   :  { %s2550_s0 = inlined_call_operand.hbm [shape: f32[2,8,32], index: 0, kind: input, shape index: {}]   ;;  %s2551_s1 = inlined_call_operand.hbm [shape: f32[2,8,32], index: 1, kind: input, shape index: {}]   ;;  %s2552_s2 = inlined_call_operand.hbm [shape: f32[2,8,32], index: 2, kind: input, shape index: {}]   ;;  %s2553_s3 = inlined_call_operand.hbm [shape: f32[32,32], index: 3, kind: input, shape index: {}]   ;;  %s2554_s4 = inlined_call_operand.hbm [shape: f32[32,32], index: 4, kind: input, shape index: {}]   ;;  %s2555_s5 = inlined_call_operand.hbm [shape: f32[32,32], index: 5, kind: input, shape index: {}]   ;;  %s2556_s6 = inlined_call_operand.vmem [shape: f32[1,32], index: 6, kind: input, shape index: {}]   ;;  %s2557_s7 = inlined_call_operand.vmem [shape: f32[1,32], index: 7, kind: input, shape index: {}]   ;;  %s2558_s8 = inlined_call_operand.vmem [shape: f32[1,32], index: 8, kind: input, shape index: {}]   ;;  %s2559_s9 = inlined_call_operand.hbm [shape: f32[2,8,32], index: 9, kind: output, shape index: {}]  }
   0x1   :  { %2585 = sst [smem:[#allocation25_spill]] %s2551_s1 }
   0x2   :  { %2586 = sst [smem:[#allocation26_spill]] %s2553_s3 }
   0x3   :  { %2587 = sst [smem:[#allocation27_spill]] %s2558_s8 }
   0x4   :  { %2588 = sst [smem:[#allocation28_spill]] %s2559_s9 }
   0x5   :  { %14 = vsyncpa [#allocation3], 0 }
   0x6   :  { %16 = vsyncpa [#allocation3 + $0x1], 0 }
   0x7   :  { %17 = vsyncpa [#allocation6], 0 }
   0x8   :  { %19 = vsyncpa [#allocation6 + $0x1], 0 }
   0x9   :  { %20 = vsyncpa [#allocation9], 0 }
   0xa   :  { %21 = vsyncpa [#allocation12], 0 }
   0xb   :  { %22 = vsyncpa [#allocation4], 0 }
   0xc   :  { %24 = vsyncpa [#allocation4 + $0x1], 0  ;;  %s2143_s30 = smov 0   ;;  %s2145_s10 = smov 0  }
   0xd   :  { %s2147_s11 = smov 0   ;;  %s2149_s12 = smov 0  }
   0xe LB: > { %2589 = sst [smem:[#allocation19_spill]] %s2061_s30  ;;  %s2164_s13 = sadd.s32 4294967295, %s2073_s12   ;;  %s2073_s12 = sphi %s2149_s12, %s2630_s12   ;;  %s2069_s11 = sphi %s2147_s11, %s2634_s11   ;;  %s2065_s10 = sphi %s2145_s10, %s2633_s10   ;;  %s2061_s30 = sphi %s2143_s30, %s2632_s30  }
   0xf   : > { %2590 = sst [smem:[#allocation20_spill]] %s2073_s12  ;;  %s1543_s14 = sadd.s32 4294967294, %s2073_s12  }
  0x10   : > { %p50_p0 = scmp.ne.s32.totalorder %s2065_s10, %s2061_s30  ;;  %p2560_p1 = scmp.eq.s32.totalorder %s2164_s13, 0 }
  0x11   : > { %p258_p3 = scmp.eq.s32.totalorder %s1543_s14, 1  ;;  %p1544_p5 = scmp.ge.s32.totalorder %s2073_s12, 1 }
  0x12   : > { %p2173_p4 = por %p2560_p1, %p50_p0  ;;  %p265_p7 = scmp.lt.s32.totalorder %s2073_s12, 3 }
  0x13   : > { %p2178_p6 = por %p258_p3, %p50_p0  ;;  %s2075_s18 = smov [#allocation8]  }
  0x14   : > { %s2591_s15 = scalar_select %p2173_p4, 1, 0 }
  0x15   : > { %s2592_s16 = scalar_select %p2178_p6, 1, 0 }
  0x16   : > { %p2183_p8 = pnand %p1544_p5, %p265_p7  ;;  %s277_s19 = sshll.u32 %s2075_s18, 4  ;;  %s2187_s19 = int_to_ptr.vmem [resolvable:$true] %s277_s19 }
  0x17   : > { %2593 = sst [smem:[#allocation21_spill]] %s2592_s16  ;;  %s2199_s21 = sadd.s32 1, %s2073_s12  }
  0x18   : > { %s2594_s17 = scalar_select %p2183_p8, 1, 0 }
  0x19   : > { %p1727_p9 = pneg %p2183_p8  ;;  %2596 = sst [smem:[#allocation22_spill]] %s2199_s21 }
  0x1a   : > { %s37_s22 = sadd.s32 1, %s2069_s11  ;;  %s34_s23 = ssub.s32 %s2073_s12, %s2199_s21 }
  0x1b   : > { %p2194_p11 = pnand %p1727_p9, %p2560_p1  ;;  %s2597_s3 = sld [smem:[#allocation26_spill]] }
  0x1d   : > { %s2595_s20 = scalar_select %p2194_p11, 1, 0 }
  0x1e   : > { %p2212_p13 = pneg %p2194_p11 }
  0x20   : > { %s2598_s29 = scalar_select %p2212_p13, 1, 0 }
  0x21   : > { %s1821_s26 = scalar_lea.hbm %s2597_s3, 512 }
  0x22   : > { %p1822_p12 = scmp.ne.s32.totalorder %s2597_s3, %s1821_s26  ;;  %p1828_p5 = scmp.lt.u32.totalorder %s1821_s26, %s2597_s3 }
  0x24   : > { %p1824_p0 = pnand %p2212_p13, %p1822_p12 }
  0x26   : > { %p1825_p3 = pneg %p1824_p0 }
  0x28   : > { %p1830_p7 = pnand %p1828_p5, %p1825_p3 }
  0x2a   : > { %1833 = shalt.err (!%p1830_p7)
}
  0x2b   : > { %s1834_s24 = scalar_lea.vmem %s2187_s19, 512  ;;  %p1842_p2 = scmp.lt.s32.totalorder %s2187_s19, %s2187_s19 }
  0x2c   : > { %p1835_p9 = scmp.ne.s32.totalorder %s2187_s19, %s1834_s24  ;;  %p1843_p6 = scmp.lt.s32.totalorder %s1834_s24, %s1834_s24 }
  0x2e   : > { %p1837_p10 = pnand %p1835_p9, %p2212_p13  ;;  %p1844_p12 = por %p1843_p6, %p1842_p2 }
  0x30   : > { %p1838_p1 = pneg %p1837_p10 }
  0x32   : > { %p1845_p0 = pnand %p1844_p12, %p1838_p1 }
  0x34   : > { %1848 = shalt.err (!%p1845_p0)
}
  0x35   : > { %s2564_s25 = smov 128   ;;  %s2566_s26 = smov 8  }
  0x36   : > { %1730 = dma.hbm_to_vmem [thread:$0]  (!%p2194_p11), %s2597_s3, 512, %s2187_s19, [#allocation9], %s2564_s25, %s2564_s25, %s2566_s26  }
  0x37   : > { %p35_p1 = scmp.eq.s32.totalorder %s34_s23, 0  ;;  %p44_p2 = scmp.ne.s32.totalorder %s2069_s11, %s2065_s10 }
  0x38   : > { %p45_p6 = scmp.eq.s32.totalorder %s2073_s12, 0  ;;  %p1754_p10 = scmp.lt.s32.totalorder %s2073_s12, 2 }
  0x39   : > { %s2241_s14 = scalar_select %p35_p1, %s2069_s11, %s37_s22  }
  0x3a   : > { %p46_p3 = por %p45_p6, %p44_p2  ;;  %p2600_p5 = scmp.eq.s32.totalorder %s2164_s13, 1 }
  0x3b   : > { %2599 = sst [smem:[#allocation23_spill]] %s2241_s14  ;;  %s2568_s24 = sand.u32 1, %s2069_s11  }
  0x3c   : > { %p2245_p7 = por %p2600_p5, %p44_p2  ;;  %s2251_s21 = sshll.u32 %s2073_s12, 7 }
  0x3d   : > { %s2255_s16 = sshll.u32 %s2568_s24, 3  ;;  %p2257_p9 = pnand %p1754_p10, %p46_p3 }
  0x3e   : > { %s2601_s18 = scalar_select %p2245_p7, 1, 0 }
  0x3f   : > { %s2603_s19 = scalar_select %p2257_p9, 1, 0 }
  0x40   : > { %2602 = sst [smem:[#allocation24_spill]] %s2601_s18  ;;  %s344_s22 = sand.u32 1, %s2073_s12  }
  0x41   : > { %s2604_s1 = sld [smem:[#allocation25_spill]]  ;;  %s348_s25 = scalar_lea.vmem [#allocation5], %s2255_s16 }
  0x42   : > { %s355_s26 = sshll.u32 %s348_s25, 4  ;;  %s2271_s24 = scalar_lea.sflag [#allocation6], %s344_s22  ;;  %s2269_s26 = int_to_ptr.vmem [resolvable:$true] %s355_s26 }
  0x43   : > { %p2277_p0 = pneg %p2257_p9 }
  0x45   : > { %s2605_s14 = scalar_select %p2277_p0, 1, 0 }
  0x47   : > { %s2266_s28 = scalar_lea.hbm %s2604_s1, %s2251_s21  ;;  %s1854_s12 = scalar_lea.hbm %s2604_s1, 256 }
  0x48   : > { %s1849_s3 = scalar_lea.hbm %s2266_s28, 128  ;;  %p1855_p6 = scmp.lt.u32.totalorder %s2266_s28, %s2604_s1 }
  0x49   : > { %p1850_p12 = scmp.ne.s32.totalorder %s2266_s28, %s1849_s3  ;;  %p1856_p10 = scmp.lt.u32.totalorder %s1854_s12, %s1849_s3 }
  0x4a   : > { %p1858_p5 = scmp.lt.u32.totalorder %s1849_s3, %s2266_s28 }
  0x4b   : > { %p1852_p1 = pnand %p2277_p0, %p1850_p12  ;;  %p1857_p3 = por %p1856_p10, %p1855_p6 }
  0x4d   : > { %p1853_p2 = pneg %p1852_p1  ;;  %p1859_p7 = por %p1858_p5, %p1857_p3 }
  0x4f   : > { %p1860_p4 = pnand %p1859_p7, %p1853_p2 }
  0x51   : > { %1863 = shalt.err (!%p1860_p4)
}
  0x52   : > { %s1864_s22 = scalar_lea.vmem %s2269_s26, 128  ;;  %s2078_s23 = smov [#allocation5]  }
  0x53   : > { %p1865_p12 = scmp.ne.s32.totalorder %s2269_s26, %s1864_s22  ;;  %s1869_s27 = sshll.u32 %s2078_s23, 4  ;;  %s1870_s27 = int_to_ptr.vmem [resolvable:$false] %s1869_s27 }
  0x54   : > { %s1871_s30 = scalar_lea.vmem %s1870_s27, 256  ;;  %p1872_p11 = scmp.lt.s32.totalorder %s2269_s26, %s1870_s27 }
  0x55   : > { %p1867_p1 = pnand %p1865_p12, %p2277_p0  ;;  %p1873_p13 = scmp.lt.s32.totalorder %s1871_s30, %s1864_s22 }
  0x57   : > { %p1868_p8 = pneg %p1867_p1  ;;  %p1874_p6 = por %p1873_p13, %p1872_p11 }
  0x59   : > { %p1875_p10 = pnand %p1874_p6, %p1868_p8 }
  0x5b   : > { %1878 = shalt.err (!%p1875_p10)
}
  0x5c   : > { %1743 = dma.hbm_to_vmem [thread:$0]  (!%p2257_p9), %s2266_s28, 128, %s2269_s26, %s2271_s24  }
  0x5d   : > { %s2079_s3 = smov [#allocation10]   ;;  %s2080_s25 = smov [#allocation11]  }
  0x5e   : > { %s290_s12 = sshll.u32 %s2079_s3, 4  ;;  %s303_s1 = sshll.u32 %s2080_s25, 4  ;;  %s291_s12 = int_to_ptr.vmem [resolvable:$true] %s290_s12  ;;  %s304_s1 = int_to_ptr.vmem [resolvable:$true] %s303_s1 }
  0x5f   : > { %s1879_s27 = scalar_lea.hbm %s2554_s4, 512  ;;  %p2606_p8 = scmp.ne.s32.totalorder %s2598_s29, 0 }
  0x60   : > { %p1880_p4 = scmp.ne.s32.totalorder %s2554_s4, %s1879_s27  ;;  %p1886_p7 = scmp.lt.u32.totalorder %s1879_s27, %s2554_s4 }
  0x62   : > { %p1882_p11 = pnand %p1880_p4, %p2606_p8 }
  0x64   : > { %p1883_p13 = pneg %p1882_p11 }
  0x66   : > { %p1888_p2 = pnand %p1886_p7, %p1883_p13 }
  0x68   : > { %1891 = shalt.err (!%p1888_p2)
}
  0x69   : > { %s1892_s26 = scalar_lea.vmem %s291_s12, 512  ;;  %p1900_p1 = scmp.lt.s32.totalorder %s291_s12, %s291_s12 }
  0x6a   : > { %p1893_p3 = scmp.ne.s32.totalorder %s291_s12, %s1892_s26  ;;  %p1901_p6 = scmp.lt.s32.totalorder %s1892_s26, %s1892_s26 }
  0x6c   : > { %p1895_p5 = pnand %p1893_p3, %p2606_p8  ;;  %p1902_p10 = por %p1901_p6, %p1900_p1 }
  0x6e   : > { %p1896_p12 = pneg %p1895_p5 }
  0x70   : > { %p1903_p9 = pnand %p1902_p10, %p1896_p12 }
  0x72   : > { %1906 = shalt.err (!%p1903_p9)
}
  0x73   : > { %p2607_p4 = scmp.ne.s32.totalorder %s2595_s20, 0  ;;  %s2608_s9 = smov 8  }
  0x74   : > { %s2609_s28 = smov 128   ;;  %s1907_s23 = scalar_lea.hbm %s2555_s5, 512 }
  0x75   : > { %1733 = dma.hbm_to_vmem [thread:$0]  (!%p2607_p4), %s2554_s4, 512, %s291_s12, [#allocation9], %s2609_s28, %s2609_s28, %s2608_s9  }
  0x76   : > { %p1908_p11 = scmp.ne.s32.totalorder %s2555_s5, %s1907_s23  ;;  %p1914_p7 = scmp.lt.u32.totalorder %s1907_s23, %s2555_s5 }
  0x78   : > { %p1910_p9 = pnand %p1908_p11, %p2606_p8 }
  0x7a   : > { %p1911_p13 = pneg %p1910_p9 }
  0x7c   : > { %p1916_p2 = pnand %p1914_p7, %p1911_p13 }
  0x7e   : > { %1919 = shalt.err (!%p1916_p2)
}
  0x7f   : > { %s1920_s8 = scalar_lea.vmem %s304_s1, 512  ;;  %p1928_p1 = scmp.lt.s32.totalorder %s304_s1, %s304_s1 }
  0x80   : > { %p1921_p3 = scmp.ne.s32.totalorder %s304_s1, %s1920_s8  ;;  %p1929_p6 = scmp.lt.s32.totalorder %s1920_s8, %s1920_s8 }
  0x82   : > { %p1923_p5 = pnand %p1921_p3, %p2606_p8  ;;  %p1930_p10 = por %p1929_p6, %p1928_p1 }
  0x84   : > { %p1924_p12 = pneg %p1923_p5 }
  0x86   : > { %p1931_p0 = pnand %p1930_p10, %p1924_p12 }
  0x88   : > { %1934 = shalt.err (!%p1931_p0)
}
  0x89   : > { %1736 = dma.hbm_to_vmem [thread:$0]  (!%p2607_p4), %s2555_s5, 512, %s304_s1, [#allocation12], %s2609_s28, %s2609_s28, %s2608_s9  }
  0x8a   : > { %s2347_s25 = scalar_lea.hbm %s2550_s0, %s2251_s21  ;;  %s330_s20 = scalar_lea.vmem [#allocation2], %s2255_s16 }
  0x8b   : > { %s337_s23 = sshll.u32 %s330_s20, 4  ;;  %s2356_s30 = scalar_lea.hbm %s2552_s2, %s2251_s21  ;;  %s2350_s23 = int_to_ptr.vmem [resolvable:$true] %s337_s23 }
  0x8c   : > { %s2610_s26 = sand.u32 1, %s2069_s11   ;;  %s1935_s9 = scalar_lea.hbm %s2347_s25, 128 }
  0x8d   : > { %s327_s1 = scalar_lea.sflag [#allocation3], %s2610_s26  ;;  %p1936_p0 = scmp.ne.s32.totalorder %s2347_s25, %s1935_s9 }
  0x8e   : > { %p2611_p8 = scmp.ne.s32.totalorder %s2605_s14, 0  ;;  %s1940_s12 = scalar_lea.hbm %s2550_s0, 256 }
  0x8f   : > { %p1941_p9 = scmp.lt.u32.totalorder %s2347_s25, %s2550_s0  ;;  %p1942_p13 = scmp.lt.u32.totalorder %s1940_s12, %s1935_s9 }
  0x90   : > { %p1938_p4 = pnand %p1936_p0, %p2611_p8  ;;  %p1944_p2 = scmp.lt.u32.totalorder %s1935_s9, %s2347_s25 }
  0x91   : > { %p1943_p7 = por %p1942_p13, %p1941_p9 }
  0x92   : > { %p1939_p11 = pneg %p1938_p4 }
  0x93   : > { %p1945_p3 = por %p1944_p2, %p1943_p7 }
  0x95   : > { %p1946_p5 = pnand %p1945_p3, %p1939_p11 }
  0x97   : > { %1949 = shalt.err (!%p1946_p5)
}
  0x98   : > { %s1950_s21 = scalar_lea.vmem %s2350_s23, 128  ;;  %s2081_s3 = smov [#allocation2]  }
  0x99   : > { %p1951_p12 = scmp.ne.s32.totalorder %s2350_s23, %s1950_s21  ;;  %s1955_s20 = sshll.u32 %s2081_s3, 4  ;;  %s1956_s20 = int_to_ptr.vmem [resolvable:$false] %s1955_s20 }
  0x9a   : > { %s1957_s27 = scalar_lea.vmem %s1956_s20, 256  ;;  %p1958_p10 = scmp.lt.s32.totalorder %s2350_s23, %s1956_s20 }
  0x9b   : > { %p1953_p1 = pnand %p1951_p12, %p2611_p8  ;;  %p1959_p0 = scmp.lt.s32.totalorder %s1957_s27, %s1950_s21 }
  0x9d   : > { %p1954_p6 = pneg %p1953_p1  ;;  %p1960_p4 = por %p1959_p0, %p1958_p10 }
  0x9f   : > { %p1961_p9 = pnand %p1960_p4, %p1954_p6 }
  0xa1   : > { %1964 = shalt.err (!%p1961_p9)
}
  0xa2   : > { %p2612_p11 = scmp.ne.s32.totalorder %s2603_s19, 0  ;;  %s366_s22 = scalar_lea.vmem [#allocation7], %s2255_s16 }
  0xa3   : > { %s373_s26 = sshll.u32 %s366_s22, 4  ;;  %s1965_s9 = scalar_lea.hbm %s2356_s30, 128  ;;  %s374_s26 = int_to_ptr.vmem [resolvable:$true] %s373_s26 }
  0xa4   : > { %1740 = dma.hbm_to_vmem [thread:$0]  (!%p2612_p11), %s2347_s25, 128, %s2350_s23, %s327_s1  }
  0xa5   : > { %p1966_p13 = scmp.ne.s32.totalorder %s2356_s30, %s1965_s9  ;;  %s1970_s12 = scalar_lea.hbm %s2552_s2, 256 }
  0xa6   : > { %p1971_p3 = scmp.lt.u32.totalorder %s2356_s30, %s2552_s2  ;;  %p1972_p5 = scmp.lt.u32.totalorder %s1970_s12, %s1965_s9 }
  0xa7   : > { %p1968_p7 = pnand %p1966_p13, %p2611_p8  ;;  %p1974_p1 = scmp.lt.u32.totalorder %s1965_s9, %s2356_s30 }
  0xa8   : > { %p1973_p12 = por %p1972_p5, %p1971_p3 }
  0xa9   : > { %p1969_p2 = pneg %p1968_p7 }
  0xaa   : > { %p1975_p6 = por %p1974_p1, %p1973_p12 }
  0xac   : > { %p1976_p10 = pnand %p1975_p6, %p1969_p2 }
  0xae   : > { %1979 = shalt.err (!%p1976_p10)
}
  0xaf   : > { %s1980_s16 = scalar_lea.vmem %s374_s26, 128  ;;  %s2082_s25 = smov [#allocation7]  }
  0xb0   : > { %p1981_p0 = scmp.ne.s32.totalorder %s374_s26, %s1980_s16  ;;  %s1985_s23 = sshll.u32 %s2082_s25, 4  ;;  %s1986_s23 = int_to_ptr.vmem [resolvable:$false] %s1985_s23 }
  0xb1   : > { %s1987_s1 = scalar_lea.vmem %s1986_s23, 256  ;;  %p1988_p13 = scmp.lt.s32.totalorder %s374_s26, %s1986_s23 }
  0xb2   : > { %p1983_p4 = pnand %p1981_p0, %p2611_p8  ;;  %p1989_p7 = scmp.lt.s32.totalorder %s1987_s1, %s1980_s16 }
  0xb4   : > { %p1984_p9 = pneg %p1983_p4  ;;  %p1990_p11 = por %p1989_p7, %p1988_p13 }
  0xb6   : > { %p1991_p3 = pnand %p1990_p11, %p1984_p9 }
  0xb8   : > { %1994 = shalt.err (!%p1991_p3)
}
  0xb9   : > { %p2613_p5 = scmp.ne.s32.totalorder %s2603_s19, 0  ;;  %p2614_p2 = scmp.ne.s32.totalorder %s2594_s17, 0 }
  0xba   : > { %s2403_s14 = sand.u32 (!%p2614_p2), 1, %s2065_s10   ;;  %p2615_p8 = scmp.ne.s32.totalorder (!%p2614_p2), %s2591_s15, 0 }
  0xbb   : > { %1746 = dma.hbm_to_vmem [thread:$0]  (!%p2613_p5), %s2356_s30, 128, %s374_s26, %s2271_s24  }
  0xbc   : > { %382 = sbr.rel (%p2614_p2) target bundleno = 1282 (0x502), region = 56  ;;  %s2406_s21 = sshll.u32 (!%p2614_p2), %s2403_s14, 3 }
  0xbd   : > { %s385_s3 = scalar_lea.sflag (!%p2614_p2), [#allocation3], %s2403_s14  ;;  %s388_s20 = scalar_lea.vmem (!%p2614_p2), [#allocation2], %s2406_s21 }
  0xc3   : > { %2040 = dma.done.wait (%p2615_p8), %s385_s3, 128  }
  0xc4   : > { %2042 = vsyncadd (%p2615_p8), %s385_s3, 4294967168  ;;  %s393_s17 = sand.u32 1, %s2164_s13   ;;  %s397_s19 = scalar_lea.vmem [#allocation5], %s2406_s21 }
  0xc5   : > { %s394_s24 = scalar_lea.sflag [#allocation6], %s393_s17 }
  0xc6   : > { %2044 = dma.done.wait (%p2615_p8), %s394_s24, 256  }
  0xc7   : > { %2046 = vsyncadd (%p2615_p8), %s394_s24, 4294967040  ;;  %s406_s30 = scalar_lea.vmem [#allocation7], %s2406_s21  ;;  %p2616_p11 = scmp.eq.s32.totalorder %s2164_s13, 0 }
  0xc9   : > { %2048 = dma.done.wait (%p2616_p11), [#allocation9], 1024   ;;  %p2617_p12 = pmov %p2616_p11 }
  0xca   : > { %p2618_p1 = pmov %p2616_p11 }
  0xcb   : > { %2050 = vsyncadd (%p2617_p12), [#allocation9], 4294966272 }
  0xcc   : > { %2052 = dma.done.wait (%p2618_p1), [#allocation12], 512   ;;  %p2619_p6 = pmov %p2618_p1 }
  0xcd   : > { %v2083_v0 = vmov 0.0|0.0   ;;  %vm2084_vm0 = vmmov 0   ;;  %v2085_v1 = vmov 0.0   ;;  %v552_v2 = vld [vmem:[#allocation10] sm:$0xff]  ;;  %v553_v3 = vld [vmem:[#allocation10 + $0x8] sm:$0xff]  ;;  %v554_v7 = vld [vmem:[#allocation10 + $0x10] sm:$0xff] }
  0xce   : > { %2054 = vsyncadd (%p2619_p6), [#allocation12], 4294966784  ;;  %1695 = vmatprep.subr.bf16.mxu1 %v2083_v0  ;;  %1689 = vmatprep.subr.bf16.mxu0 %v2083_v0  ;;  %v466_v4 = vld [vmem:[#allocation8] sm:$0xff]  ;;  %v1696_v5 = vpack.c.bf16 %v553_v3, %v552_v2  ;;  %v467_v6 = vld [vmem:[#allocation8 + $0x8] sm:$0xff]  ;;  %vm477_vm1 = vcmask 261120   ;;  %vm720_vm2 = vcmask 64512  }
  0xcf   : > { %1635 = vmatprep.mubr.msk.f32.mxu1 %vm2084_vm0, %v2085_v1  ;;  %1624 = vmatprep.mubr.msk.f32.mxu0 %vm2084_vm0, %v2085_v1  ;;  %v555_v8 = vld [vmem:[#allocation10 + $0x18] sm:$0xff]  ;;  %v1690_v9 = vpack.c.bf16 %v467_v6, %v466_v4  ;;  %v468_v10 = vld [vmem:[#allocation8 + $0x10] sm:$0xff]  ;;  %v464_v14 = vld [vmem:[%s397_s19] sm:$0xff]  ;;  %s2086_s9 = smov 112   ;;  %s2087_s28 = smov 120   ;;  %vm1382_vm3 = vcmask 130048  }
  0xd0   : > { %v469_v11 = vld [vmem:[#allocation8 + $0x18] sm:$0xff]  ;;  %1697 = vmatpush3.bf16.msra.mxu1 %v1696_v5  ;;  %v1699_v12 = vpack.c.bf16 %v555_v8, %v554_v7  ;;  %v636_v16 = vld [vmem:[#allocation11] sm:$0xff]  ;;  %v637_v17 = vld [vmem:[#allocation11 + $0x8] sm:$0xff]  ;;  %s2088_s8 = smov 104   ;;  %s2620_s29 = sld [smem:[#allocation27_spill]]  ;;  %vm1384_vm4 = vcmask 195584  }
  0xd1   : > { %1691 = vmatpush3.bf16.msra.mxu0 %v1690_v9  ;;  %1698 = vmatprep.subr.bf16.mxu1 %v2083_v0  ;;  %v1693_v13 = vpack.c.bf16 %v469_v11, %v468_v10  ;;  %v463_v15 = vld [vmem:[%s388_s20] sm:$0xff]  ;;  %v1702_v19 = vpack.c.bf16 %v637_v17, %v636_v16  ;;  %s2089_s16 = smov 8   ;;  %s2090_s25 = smov 16  }
  0xd2   : > { %1692 = vmatprep.subr.bf16.mxu0 %v2083_v0  ;;  %v638_v18 = vld [vmem:[#allocation11 + $0x10] sm:$0xff]  ;;  %v639_v20 = vld [vmem:[#allocation11 + $0x18] sm:$0xff]  ;;  %s2091_s23 = smov 24   ;;  %s2621_s1 = sld [smem:[#allocation24_spill]] }
  0xd3   : > { %v1705_v21 = vpack.c.bf16 %v639_v20, %v638_v18  ;;  %v465_v22 = vld [vmem:[%s406_s30] sm:$0xff]  ;;  %s1582_s3 = sshll.u32 %s2164_s13, 7  ;;  %s462_s20 = scalar_lea.vmem [#allocation13], %s2406_s21 }
  0xd4   : > { %1700 = vmatpush3.bf16.msra.mxu1 %v1699_v12  ;;  %v1565_v23 = vld [vmem:[%s2557_s7] ss:$0 sm:$0xff]  ;;  %s1401_s17 = sshll.u32 %s462_s20, 4  ;;  %s2622_s30 = sld [smem:[#allocation28_spill]]  ;;  %s2507_s17 = int_to_ptr.vmem [resolvable:$true] %s1401_s17 }
  0xd5   : > { %1694 = vmatpush3.bf16.msra.mxu0 %v1693_v13  ;;  %1649 = vmatprep.subr.mxu1 %v2085_v1  ;;  %v1563_v24 = vld [vmem:[%s2556_s6] ss:$0 sm:$0xff]  ;;  %s1388_s13 = scalar_lea.sflag [#allocation4], %s2403_s14  ;;  %s1995_s21 = scalar_lea.vmem %s2507_s17, 128 }
  0xd6   : > { %1701 = vmatprep.subr.bf16.mxu0 %v2083_v0  ;;  %v1567_v32 = vld [vmem:[%s2620_s29] ss:$0 sm:$0xff]  ;;  %p1996_p10 = scmp.ne.s32.totalorder %s2507_s17, %s1995_s21  ;;  %s2092_s22 = smov [#allocation13]  }
  0xd7   : > { %1636 = vmatmul.mubr.msk.f32.vlgmr.msra.gmra.mrb[0].mxu1 %vm477_vm1, %v464_v14  ;;  %s1999_s26 = sshll.u32 %s2092_s22, 4  ;;  %s2000_s26 = int_to_ptr.vmem [resolvable:$false] %s1999_s26 }
  0xd8   : > { %1625 = vmatmul.mubr.msk.f32.vlgmr.msra.gmra.mrb[0].mxu0 %vm477_vm1, %v463_v15  ;;  %1651 = vmatprep.mubr.msk.f32.mxu1 %vm2084_vm0, %v2085_v1  ;;  %p2624_p0 = scmp.ne.s32.totalorder %s2621_s1, 0  ;;  %p2002_p13 = scmp.lt.s32.totalorder %s2507_s17, %s2000_s26 }
  0xd9   : > { %1646 = vmatprep.mubr.msk.f32.mxu0 %vm2084_vm0, %v2085_v1  ;;  %1703 = vmatpush3.bf16.msra.mxu0 %v1702_v19 }
  0xda   : > { %1704 = vmatprep.subr.bf16.mxu0 %v2083_v0  ;;  %s2623_s15 = smov %s2622_s30  ;;  %s2505_s27 = scalar_lea.hbm %s2622_s30, %s1582_s3 }
  0xdb   : > { %p1997_p4 = pnand %p1996_p10, %p2624_p0 }
  0xdd   : > { %1706 = vmatpush3.bf16.msra.mxu0 %v1705_v21  ;;  %p1998_p9 = pneg %p1997_p4 }
  0xde   : > { %1659 = vmatprep.subr.mxu0 %v2085_v1 }
  0xe0   : > { %1647 = vmatmul.mubr.msk.f32.vlgmr.msra.gmra.mrb[2].mxu0 %vm477_vm1, %v465_v22 }
  0xe1   : > { %1661 = vmatprep.mubr.msk.f32.mxu0 %vm2084_vm0, %v2085_v1 }
 0x1aa   : > { %v632_v25 = vpop.f32.mrb[0].mxu1 }
 0x1ab   : > { %v633_v26 = vadd.f32 %v1565_v23, %v632_v25  ;;  %v547_v27 = vpop.f32.mrb[0].mxu0  ;;  %v1637_v28 = vpop.f32.mrb[1].mxu1 }
 0x1ac   : > { %v548_v29 = vadd.f32 %v1563_v24, %v547_v27  ;;  %v1626_v30 = vpop.f32.mrb[1].mxu0 }
 0x1ad   : > { %1045 = vrot.lane.b32.xlu1 %v633_v26, %s2086_s9  ;;  %881 = vrot.lane.b32.xlu0 %v633_v26, %s2087_s28 }
 0x1ae   : > { %v551_v31 = vmul.f32 0.35355338, %v548_v29  ;;  %1650 = vmatpush3.xpose.msk.msra.mxu1 %vm720_vm2, %v633_v26 }
 0x1af   : > { %1654 = vmatprep.subr.mxu1 %v2085_v1 }
 0x1b1   : > { %1652 = vmatmul.mubr.msk.f32.vlgmr.msra.gmra.mrb[2].mxu1 %vm720_vm2, %v551_v31  ;;  %1043 = vrot.lane.b32.xlu1 %v551_v31, %s2086_s9 }
 0x1b2   : > { %879 = vrot.lane.b32.xlu0 %v551_v31, %s2087_s28  ;;  %1656 = vmatprep.mubr.msk.f32.mxu1 %vm2084_vm0, %v2085_v1 }
 0x1b3   : > { %v716_v33 = vpop.f32.mrb[2].mxu0 }
 0x1b4   : > { %v717_v34 = vadd.f32 %v1567_v32, %v716_v33  ;;  %v1648_v35 = vpop.f32.mrb[3].mxu0 }
 0x1b5   : > { %1206 = vrot.lane.b32.xlu1 %v551_v31, %s2088_s8 }
 0x1b6   : > { %1208 = vrot.lane.b32.xlu0 %v633_v26, %s2088_s8  ;;  %1655 = vmatpush3.msra.mxu1 %v717_v34 }
 0x1b7   : > { %1664 = vmatprep.subr.mxu1 %v2085_v1 }
 0x1b9   : > { %967 = vrot.lane.b32.xlu1 %v717_v34, %s2087_s28 }
 0x21f   : > { %v882_v36 = vpop.permute.xlu0 %881  ;;  %v1046_v37 = vpop.permute.xlu1 %1045 }
 0x220   : > { %1660 = vmatpush3.xpose.msk.msra.mxu0 %vm720_vm2, %v882_v36 }
 0x221   : > { %1669 = vmatprep.subr.mxu0 %v2085_v1 }
 0x223   : > { %v1044_v39 = vpop.permute.xlu1 %1043 }
 0x224   : > { %v880_v38 = vpop.permute.xlu0 %879 }
 0x225   : > { %1662 = vmatmul.mubr.msk.f32.vlgmr.msra.gmra.mrb[4].mxu0 %vm720_vm2, %v880_v38 }
 0x226   : > { %1670 = vmatpush3.xpose.msk.msra.mxu0 %vm720_vm2, %v1046_v37  ;;  %1671 = vmatprep.mubr.msk.f32.mxu0 %vm2084_vm0, %v2085_v1 }
 0x227   : > { %1679 = vmatprep.subr.mxu0 %v2085_v1  ;;  %v1207_v41 = vpop.permute.xlu1 %1206 }
 0x228   : > { %v1209_v40 = vpop.permute.xlu0 %1208 }
 0x229   : > { %1672 = vmatmul.mubr.msk.f32.vlgmr.msra.gmra.mrb[6].mxu0 %vm720_vm2, %v1044_v39 }
 0x22a   : > { %1680 = vmatpush3.xpose.msk.msra.mxu0 %vm720_vm2, %v1209_v40  ;;  %1681 = vmatprep.mubr.msk.f32.mxu0 %vm2084_vm0, %v2085_v1 }
 0x22b   : > { %v968_v3 = vpop.permute.xlu1 %967 }
 0x22d   : > { %1682 = vmatmul.mubr.msk.f32.vlgmr.msra.gmra.mrb[8].mxu0 %vm720_vm2, %v1207_v41 }
 0x284   : > { %v793_v42 = vpop.f32.mrb[2].mxu1 }
 0x285   : > { %v797_v43 = vmul.f32 1.442695, %v793_v42  ;;  %v1653_v44 = vpop.f32.mrb[3].mxu1 }
 0x287   : > { %1805 = vpow2.f32 %v797_v43 }
 0x291   : > { %v1806_v45 = vpop.eup %1805 }
 0x292   : > { %v799_v46 = vsel %vm720_vm2, %v1806_v45, 0.0 }
 0x293   : > { %800 = vadd.xlane.f32.xlu0 %v799_v46 }
 0x2f8   : > { %v953_v47 = vpop.f32.mrb[4].mxu0 }
 0x2f9   : > { %v957_v48 = vmul.f32 1.442695, %v953_v47  ;;  %v1663_v49 = vpop.f32.mrb[5].mxu0 }
 0x2fb   : > { %1807 = vpow2.f32 %v957_v48 }
 0x2fc   : > { %v1117_v50 = vpop.f32.mrb[6].mxu0 }
 0x2fd   : > { %v1121_v51 = vmul.f32 1.442695, %v1117_v50  ;;  %v1673_v52 = vpop.f32.mrb[7].mxu0 }
 0x2ff   : > { %1809 = vpow2.f32 %v1121_v51 }
 0x300   : > { %v1280_v53 = vpop.f32.mrb[8].mxu0 }
 0x301   : > { %v1284_v54 = vmul.f32 1.442695, %v1280_v53  ;;  %v1683_v55 = vpop.f32.mrb[9].mxu0 }
 0x303   : > { %1811 = vpow2.f32 %v1284_v54 }
 0x305   : > { %v1808_v56 = vpop.eup %1807 }
 0x306   : > { %v959_v57 = vsel %vm720_vm2, %v1808_v56, 0.0 }
 0x307   : > { %960 = vadd.xlane.f32.xlu1 %v959_v57 }
 0x309   : > { %v1810_v58 = vpop.eup %1809 }
 0x30a   : > { %v1123_v59 = vsel %vm720_vm2, %v1810_v58, 0.0 }
 0x30b   : > { %1124 = vadd.xlane.f32.xlu0 %v1123_v59 }
 0x30d   : > { %v1812_v60 = vpop.eup %1811 }
 0x30e   : > { %v1286_v61 = vsel %vm720_vm2, %v1812_v60, 0.0 }
 0x30f   : > { %1287 = vadd.xlane.f32.xlu0 %v1286_v61 }
 0x318   : > { %1293 = vrot.lane.b32.xlu1 %v717_v34, %s2088_s8 }
 0x320   : > { %v801_v62 = vpop.xlane.xlu0 %800 }
 0x321   : > { %v802_v63 = vadd.f32 1e-08, %v801_v62 }
 0x323   : > { %1813 = vrcp.f32 %v802_v63 }
 0x325   : > { %1130 = vrot.lane.b32.xlu0 %v717_v34, %s2086_s9  ;;  %s2001_s9 = scalar_lea.vmem %s2000_s26, 256 }
 0x326   : > { %p2003_p7 = scmp.lt.s32.totalorder %s2001_s9, %s1995_s21 }
 0x328   : > { %p2004_p3 = por %p2003_p7, %p2002_p13 }
 0x32a   : > { %p2005_p5 = pnand %p2004_p3, %p1998_p9 }
 0x32d   : > { %v1814_v0 = vpop.eup %1813 }
 0x32e   : > { %v805_v2 = vmul.f32 %v1814_v0, %v1806_v45 }
 0x330   : > { %1657 = vmatmul.mubr.msk.f32.vlgmr.msra.gmra.mrb[4].mxu1 %vm720_vm2, %v805_v2 }
 0x331   : > { %1665 = vmatpush3.msra.mxu1 %v968_v3  ;;  %1666 = vmatprep.mubr.msk.f32.mxu1 %vm2084_vm0, %v2085_v1 }
 0x332   : > { %1674 = vmatprep.subr.mxu1 %v2085_v1 }
 0x394   : > { %v961_v4 = vpop.xlane.xlu1 %960 }
 0x395   : > { %v962_v5 = vadd.f32 1e-08, %v961_v4 }
 0x397   : > { %1815 = vrcp.f32 %v962_v5 }
 0x398   : > { %v1125_v6 = vpop.xlane.xlu0 %1124  ;;  %v1294_v15 = vpop.permute.xlu1 %1293 }
 0x399   : > { %v1126_v7 = vadd.f32 1e-08, %v1125_v6 }
 0x39b   : > { %1817 = vrcp.f32 %v1126_v7 }
 0x39c   : > { %v1288_v8 = vpop.xlane.xlu0 %1287 }
 0x39d   : > { %v1289_v9 = vadd.f32 1e-08, %v1288_v8 }
 0x39f   : > { %1819 = vrcp.f32 %v1289_v9 }
 0x3a0   : > { %v1131_v12 = vpop.permute.xlu0 %1130 }
 0x3a1   : > { %v1816_v10 = vpop.eup %1815 }
 0x3a2   : > { %v965_v11 = vmul.f32 %v1816_v10, %v1808_v56 }
 0x3a4   : > { %1667 = vmatmul.mubr.msk.f32.vlgmr.msra.gmra.mrb[6].mxu1 %vm720_vm2, %v965_v11 }
 0x3a5   : > { %v1818_v13 = vpop.eup %1817  ;;  %1675 = vmatpush3.msra.mxu1 %v1131_v12  ;;  %1676 = vmatprep.mubr.msk.f32.mxu1 %vm2084_vm0, %v2085_v1 }
 0x3a6   : > { %1684 = vmatprep.subr.mxu1 %v2085_v1  ;;  %v1129_v14 = vmul.f32 %v1818_v13, %v1810_v58 }
 0x3a8   : > { %1677 = vmatmul.mubr.msk.f32.vlgmr.msra.gmra.mrb[8].mxu1 %vm720_vm2, %v1129_v14 }
 0x3a9   : > { %v1820_v16 = vpop.eup %1819  ;;  %1685 = vmatpush3.msra.mxu1 %v1294_v15  ;;  %1686 = vmatprep.mubr.msk.f32.mxu1 %vm2084_vm0, %v2085_v1 }
 0x3aa   : > { %v1292_v17 = vmul.f32 %v1820_v16, %v1812_v60 }
 0x3ac   : > { %1687 = vmatmul.mubr.msk.f32.vlgmr.msra.gmra.mrb[10].mxu1 %vm720_vm2, %v1292_v17 }
 0x403   : > { %v875_v18 = vpop.f32.mrb[4].mxu1 }
 0x404   : > { %v1658_v19 = vpop.f32.mrb[5].mxu1 }
 0x477   : > { %v1039_v20 = vpop.f32.mrb[6].mxu1 }
 0x478   : > { %1370 = vrot.lane.b32.xlu1 %v1039_v20, %s2089_s16  ;;  %v1668_v21 = vpop.f32.mrb[7].mxu1 }
 0x47b   : > { %v1202_v22 = vpop.f32.mrb[8].mxu1 }
 0x47c   : > { %1374 = vrot.lane.b32.xlu0 %v1202_v22, %s2090_s25  ;;  %v1678_v23 = vpop.f32.mrb[9].mxu1 }
 0x47f   : > { %v1365_v24 = vpop.f32.mrb[10].mxu1 }
 0x480   : > { %1378 = vrot.lane.b32.xlu1 %v1365_v24, %s2091_s23  ;;  %v1688_v1 = vpop.f32.mrb[11].mxu1 }
 0x4ea   : > { %v1371_v25 = vpop.permute.xlu1 %1370 }
 0x4eb   : > { %v1381_v27 = vsel %vm720_vm2, %v875_v18, %v1371_v25 }
 0x4ee   : > { %v1375_v26 = vpop.permute.xlu0 %1374 }
 0x4ef   : > { %v1383_v28 = vsel %vm1382_vm3, %v1381_v27, %v1375_v26 }
 0x4f2   : > { %v1379_v29 = vpop.permute.xlu1 %1378 }
 0x4f3   : > { %v1385_v30 = vsel %vm1384_vm4, %v1383_v28, %v1379_v29 }
 0x4f4   : > { %1386 = vst.msk [vmem:[%s462_s20] sm:$0xff] %vm477_vm1, %v1385_v30 }
 0x4f5   : > { %2008 = shalt.err (!%p2005_p5)
}
 0x4f6   : > { %s2009_s14 = scalar_lea.hbm %s2505_s27, 128  ;;  %s2013_s12 = scalar_lea.hbm %s2623_s15, 256 }
 0x4f7   : > { %p2010_p2 = scmp.ne.s32.totalorder %s2505_s27, %s2009_s14  ;;  %p2014_p12 = scmp.lt.u32.totalorder %s2505_s27, %s2623_s15 }
 0x4f8   : > { %p2015_p1 = scmp.lt.u32.totalorder %s2013_s12, %s2009_s14  ;;  %p2017_p10 = scmp.lt.u32.totalorder %s2009_s14, %s2505_s27 }
 0x4f9   : > { %p2011_p8 = pnand %p2010_p2, %p2624_p0 }
 0x4fa   : > { %p2016_p6 = por %p2015_p1, %p2014_p12 }
 0x4fb   : > { %p2012_p11 = pneg %p2011_p8 }
 0x4fc   : > { %p2018_p4 = por %p2017_p10, %p2016_p6 }
 0x4fe   : > { %p2019_p9 = pnand %p2018_p4, %p2012_p11 }
 0x500   : > { %2022 = shalt.err (!%p2019_p9)
}
 0x501   : > { %1725 = dma.vmem_to_hbm [thread:$0]  (%p2624_p0), %s2507_s17, 128, %s2505_s27, %s1388_s13  }
 0x502 PF: > { %s2625_s16 = sld [smem:[#allocation19_spill]]  ;;  %s2626_s25 = sld [smem:[#allocation21_spill]] }
 0x503   : > { %s2627_s23 = sld [smem:[#allocation20_spill]] }
 0x508   : > { %s1413_s3 = sand.u32 1, %s2625_s16   ;;  %p2628_p13 = scmp.ne.s32.totalorder %s2626_s25, 0 }
 0x509   : > { %p2629_p7 = scmp.ge.s32.totalorder %s2627_s23, 2  ;;  %s1414_s20 = scalar_lea.sflag [#allocation4], %s1413_s3 }
 0x50b   : > { %p1748_p3 = pnand %p2629_p7, %p2628_p13 }
 0x50d   : > { %2056 = dma.done.wait (!%p1748_p3), %s1414_s20, 128  }
 0x50e   : > { %2058 = vsyncadd (!%p1748_p3), %s1414_s20, 4294967168  ;;  %s2630_s12 = sld [smem:[#allocation22_spill]]  ;;  %s2631_s24 = sld [smem:[#allocation23_spill]] }
 0x50f   : > { %s2632_s30 = smov %s2065_s10  ;;  %s2633_s10 = smov %s2069_s11 }
 0x514   : > { %p27_p5 = scmp.ge.s32.totalorder %s2630_s12, 4   ;;  %s2634_s11 = smov %s2631_s24 }
 0x516   :  { %29 = sbr.rel (!%p27_p5) target bundleno = 14 (0xe), region = 137 }
 0x51d   :  { %1419 = vsyncpa [#allocation3], 1 }
 0x51e   :  { %1421 = vsyncpa [#allocation3 + $0x1], 1 }
 0x51f   :  { %1422 = vsyncpa [#allocation6], 1 }
 0x520   :  { %1424 = vsyncpa [#allocation6 + $0x1], 1 }
 0x521   :  { %1425 = vsyncpa [#allocation9], 1 }
 0x522   :  { %1426 = vsyncpa [#allocation12], 1 }
 0x523   :  { %1427 = vsyncpa [#allocation4], 1 }
 0x524   :  { %1429 = vsyncpa [#allocation4 + $0x1], 1 }

</bundles_post_ra>
